<compile_context>
chip_gen: v6e
topology: v6e:2x2x1
jax: 0.10.0
libtpu: 0.0.40
codegen_flags: <defaults>
</compile_context>

<pallas_src>
import functools

import jax
import jax.numpy as jnp
from jax.experimental import pallas as pl
from jax.experimental.pallas import tpu as pltpu

_LANE = 128
_SUBLANE = 8
_MAX_TILE_ROWS = 4096            # (4096, 128) f32 tile = 2 MiB per input buffer
_VMEM_LIMIT_BYTES = 32 * 1024 * 1024  # <= physical VMEM on v5e/v6e (128M) & v7x (64M)
_SPLIT = 2                       # shard the stream across both TCs on v7x


def _round_up(x, m):
    return -(-x // m) * m


# --------------------------------------------------------------------------
# Kernel 1: streaming BCE partial sums.
#   grid = (split, steps), dimension_semantics = ("parallel", "arbitrary").
#   Each split accumulates element-wise BCE into its own (8, 128) output block
#   (VPU adds only); cross-lane reduction is deferred to the finalize kernel.
# --------------------------------------------------------------------------
def _bce_partial_kernel(p2_ref, t2_ref, out_ref, *, rows_valid, binary_targets):
    c = pl.program_id(0)
    i = pl.program_id(1)
    steps = pl.num_programs(1)
    tile_rows = p2_ref.shape[0]

    @pl.when(i == 0)
    def _init():
        out_ref[...] = jnp.zeros_like(out_ref)

    p = p2_ref[...].astype(jnp.float32)            # (tile_rows, 128)
    t = t2_ref[...].astype(jnp.float32)

    if binary_targets:
        # Single-log fast path (valid when targets are exactly 0/1).
        contrib = -jnp.maximum(jnp.log(jnp.where(t > 0.5, p, 1.0 - p)), -100.0)
    else:
        # torch F.binary_cross_entropy clamps the log terms at -100.
        log_p = jnp.maximum(jnp.log(p), -100.0)
        log_1mp = jnp.maximum(jnp.log(1.0 - p), -100.0)
        contrib = -(t * log_p + (1.0 - t) * log_1mp)

    # Mask rows past the end of the real data (ragged last tile / over-split
    # tiles).  Applied AFTER the clamps so OOB garbage cannot produce NaN.
    row0 = (c * steps + i) * tile_rows
    row_ids = jax.lax.broadcasted_iota(jnp.int32, (tile_rows, _LANE), 0) + row0
    contrib = jnp.where(row_ids < rows_valid, contrib, 0.0)

    if tile_rows % _SUBLANE == 0:
        out_ref[...] += jnp.sum(
            contrib.reshape(tile_rows // _SUBLANE, _SUBLANE, _LANE), axis=0)
    else:
        # Tiny-tensor fallback (single small block): one sublane reduce.
        out_ref[0:1, :] += jnp.sum(contrib, axis=0, keepdims=True)


# --------------------------------------------------------------------------
# Kernel 2: finalize.  Sums the per-split BCE partials, computes the edge-dice
# term on the small (H, W) planes, and emits the combined scalar loss.
# --------------------------------------------------------------------------
def _grad_axis0(a):
    # torch.gradient (spacing=1, edge_order=1) along axis 0.
    if a.shape[0] == 2:
        d = a[1:2, :] - a[0:1, :]
        return jnp.concatenate([d, d], axis=0)
    return jnp.concatenate(
        [a[1:2, :] - a[0:1, :],
         (a[2:, :] - a[:-2, :]) * 0.5,
         a[-1:, :] - a[-2:-1, :]], axis=0)


def _grad_axis1(a):
    if a.shape[1] == 2:
        d = a[:, 1:2] - a[:, 0:1]
        return jnp.concatenate([d, d], axis=1)
    return jnp.concatenate(
        [a[:, 1:2] - a[:, 0:1],
         (a[:, 2:] - a[:, :-2]) * 0.5,
         a[:, -1:] - a[:, -2:-1]], axis=1)


def _finalize_kernel(part_ref, pe_ref, te_ref, out_ref, *,
                     n_total, eps, bce_weight, dice_weight):
    bce = jnp.sum(part_ref[...], keepdims=True) / float(n_total)    # (1, 1)

    pe = pe_ref[...].astype(jnp.float32)           # (H, W)
    te = te_ref[...].astype(jnp.float32)
    gxp, gyp = _grad_axis0(pe), _grad_axis1(pe)
    gxt, gyt = _grad_axis0(te), _grad_axis1(te)
    p_nz = (gxp * gxp + gyp * gyp) != 0.0
    t_nz = (gxt * gxt + gyt * gyt) != 0.0
    inter = jnp.sum(jnp.where(p_nz & t_nz, 1.0, 0.0), keepdims=True)
    union = (jnp.sum(jnp.where(p_nz, 1.0, 0.0), keepdims=True) +
             jnp.sum(jnp.where(t_nz, 1.0, 0.0), keepdims=True))
    edge_dice = 1.0 - 2.0 * inter / jnp.maximum(union, float(eps))

    out_ref[...] = ((bce_weight * bce + dice_weight * edge_dice) /
                    (bce_weight + dice_weight)).astype(jnp.float32)


# --------------------------------------------------------------------------
# Wrapper
# --------------------------------------------------------------------------
def bce_edge_dice_loss(prediction, target, *, reduction="mean",
                       bce_weight=1.0, dice_weight=1.0, eps=1e-6,
                       binary_targets=False):
    assert reduction == "mean"  # default path of the PyTorch module
    assert prediction.shape == target.shape and prediction.ndim == 4
    N, C, H, W = prediction.shape
    assert H >= 2 and W >= 2, "torch.gradient needs at least 2 samples per axis"
    total = N * C * H * W

    # Lane-dense streaming layout: (rows, 128).  The reshape of a contiguous
    # row-major tensor is free; only a sub-128-element tail forces a tiny pad
    # (padded with 1.0 so it contributes exactly 0 to the BCE sum).
    p_flat = prediction.reshape(-1)
    t_flat = target.reshape(-1)
    rem = total % _LANE
    if rem:
        pad = _LANE - rem
        p_flat = jnp.concatenate([p_flat, jnp.ones((pad,), p_flat.dtype)])
        t_flat = jnp.concatenate([t_flat, jnp.ones((pad,), t_flat.dtype)])
    rows = p_flat.shape[0] // _LANE
    p2 = p_flat.reshape(rows, _LANE)
    t2 = t_flat.reshape(rows, _LANE)

    tile_rows = rows if rows <= _MAX_TILE_ROWS else _MAX_TILE_ROWS
    nblocks = pl.cdiv(rows, tile_rows)
    split = _SPLIT if nblocks >= _SPLIT else 1
    steps = pl.cdiv(nblocks, split)

    # Clamp the logical block index so over-split / ragged tiles never issue a
    # fully out-of-bounds DMA; their contribution is zeroed by the row mask.
    def _in_idx(c, i):
        return (jnp.minimum(c * steps + i, nblocks - 1), 0)

    bce_kernel = functools.partial(
        _bce_partial_kernel, rows_valid=rows, binary_targets=binary_targets)

    partials = pl.pallas_call(
        bce_kernel,
        out_shape=jax.ShapeDtypeStruct((split * _SUBLANE, _LANE), jnp.float32),
        grid=(split, steps),
        in_specs=[
            pl.BlockSpec((tile_rows, _LANE), _in_idx),
            pl.BlockSpec((tile_rows, _LANE), _in_idx),
        ],
        # Per-split (8, 128) accumulator block, resident across the arbitrary
        # axis; no shared state between the two parallel splits.
        out_specs=pl.BlockSpec((_SUBLANE, _LANE), lambda c, i: (c, 0)),
        compiler_params=pltpu.CompilerParams(
            dimension_semantics=("parallel", "arbitrary"),
            vmem_limit_bytes=_VMEM_LIMIT_BYTES),
    )(p2, t2)

    # Edge/dice term only looks at the [0, 0] plane (as in the PyTorch module).
    pe = prediction[0, 0]
    te = target[0, 0]

    fin_kernel = functools.partial(
        _finalize_kernel,
        n_total=total, eps=float(eps),
        bce_weight=float(bce_weight), dice_weight=float(dice_weight))

    out = pl.pallas_call(
        fin_kernel,
        out_shape=jax.ShapeDtypeStruct((1, 1), jnp.float32),
        grid=(1,),
        in_specs=[
            pl.BlockSpec((split * _SUBLANE, _LANE), lambda i: (0, 0)),
            pl.BlockSpec((H, W), lambda i: (0, 0)),
            pl.BlockSpec((H, W), lambda i: (0, 0)),
        ],
        out_specs=pl.BlockSpec((1, 1), lambda i: (0, 0)),
    )(partials, pe, te)
    return out[0, 0]


def _reference(prediction, target, *, bce_weight=1.0, dice_weight=1.0, eps=1e-6):
    # Pure-JAX reference of the PyTorch forward (for sanity checking only).
    p = prediction.astype(jnp.float32)
    t = target.astype(jnp.float32)
    gx_p, gy_p = jnp.gradient(p[0, 0])
    gx_t, gy_t = jnp.gradient(t[0, 0])
    p_edge = gy_p * gy_p + gx_p * gx_p
    t_edge = gy_t * gy_t + gx_t * gx_t
    bin_p = jnp.where(p_edge != 0.0, 1.0, 0.0)
    bin_t = jnp.where(t_edge != 0.0, 1.0, 0.0)
    inter = jnp.sum(bin_p * bin_t)
    union = jnp.sum(bin_p) + jnp.sum(bin_t)
    edge_dice = 1.0 - 2.0 * inter / jnp.maximum(union, eps)
    log_p = jnp.maximum(jnp.log(p), -100.0)
    log_1mp = jnp.maximum(jnp.log(1.0 - p), -100.0)
    bce = jnp.mean(-(t * log_p + (1.0 - t) * log_1mp))
    return (bce_weight * bce + dice_weight * edge_dice) / (bce_weight + dice_weight)


if __name__ == "__main__":
    key = jax.random.PRNGKey(0)
    k1, k2 = jax.random.split(key)
    N, C, H, W = 2, 4, 16, 16
    # prediction must lie in (0, 1) for BCE; target in [0, 1]
    prediction = jax.nn.sigmoid(jax.random.normal(k1, (N, C, H, W), jnp.float32))
    target = (jax.random.uniform(k2, (N, C, H, W)) > 0.5).astype(jnp.float32)

    loss = jax.block_until_ready(bce_edge_dice_loss(prediction, target))
    ref = jax.block_until_ready(_reference(prediction, target))

    assert jnp.isfinite(loss)
    assert abs(float(loss) - float(ref)) < 1e-4, (float(loss), float(ref))
    print("KERNEL_OK")
</pallas_src>

<mosaic_0001>
module attributes {stable_mosaic.version = 11 : i64} {
  func.func @_bce_partial_kernel(%arg0: i32, %arg1: i32, %arg2: memref<16x128xf32, #tpu.memory_space<vmem>>, %arg3: memref<16x128xf32, #tpu.memory_space<vmem>>, %arg4: memref<8x128xf32, #tpu.memory_space<vmem>>) attributes {dimension_semantics = [#tpu.dimension_semantics<parallel>, #tpu.dimension_semantics<arbitrary>], iteration_bounds = array<i64: 1, 1>, scalar_prefetch = 0 : i64, scratch_operands = 0 : i64, tpu.core_type = #tpu.core_type<tc>, window_params = [{transform_indices = @transform_0, window_bounds = array<i64: 16, 128>}, {transform_indices = @transform_1, window_bounds = array<i64: 16, 128>}, {transform_indices = @transform_2, window_bounds = array<i64: 8, 128>}]} {
    %c0_i32 = arith.constant 0 : i32
    %0 = arith.cmpi eq, %arg1, %c0_i32 : i32
    %1 = arith.extui %0 : i1 to i32
    %c0_i32_0 = arith.constant 0 : i32
    %2 = arith.cmpi ne, %1, %c0_i32_0 : i32
    scf.if %2 {
      %cst_15 = arith.constant 0.000000e+00 : f32
      %35 = vector.broadcast %cst_15 : f32 to vector<8x128xf32>
      %c0_16 = arith.constant 0 : index
      %c0_17 = arith.constant 0 : index
      %36 = vector.load %arg4[%c0_16, %c0_17] : memref<8x128xf32, #tpu.memory_space<vmem>>, vector<8x128xf32>
      tpu.vector_store %arg4[%c0_16, %c0_17], %35 {strides = array<i32>} : memref<8x128xf32, #tpu.memory_space<vmem>>, vector<8x128xf32>,
    } else {
    }
    %c0 = arith.constant 0 : index
    %c0_1 = arith.constant 0 : index
    %3 = vector.load %arg2[%c0, %c0_1] : memref<16x128xf32, #tpu.memory_space<vmem>>, vector<16x128xf32>
    %c0_2 = arith.constant 0 : index
    %c0_3 = arith.constant 0 : index
    %4 = vector.load %arg3[%c0_2, %c0_3] : memref<16x128xf32, #tpu.memory_space<vmem>>, vector<16x128xf32>
    %5 = math.log %3 : vector<16x128xf32>
    %cst = arith.constant -1.000000e+02 : f32
    %6 = vector.broadcast %cst : f32 to vector<16x128xf32>
    %7 = arith.maximumf %5, %6 : vector<16x128xf32>
    %cst_4 = arith.constant 1.000000e+00 : f32
    %8 = vector.broadcast %cst_4 : f32 to vector<16x128xf32>
    %9 = arith.subf %8, %3 : vector<16x128xf32>
    %10 = math.log %9 : vector<16x128xf32>
    %cst_5 = arith.constant -1.000000e+02 : f32
    %11 = vector.broadcast %cst_5 : f32 to vector<16x128xf32>
    %12 = arith.maximumf %10, %11 : vector<16x128xf32>
    %13 = arith.mulf %4, %7 : vector<16x128xf32>
    %cst_6 = arith.constant 1.000000e+00 : f32
    %14 = vector.broadcast %cst_6 : f32 to vector<16x128xf32>
    %15 = arith.subf %14, %4 : vector<16x128xf32>
    %16 = arith.mulf %15, %12 : vector<16x128xf32>
    %17 = arith.addf %13, %16 : vector<16x128xf32>
    %cst_7 = arith.constant 0.000000e+00 : f32
    %18 = vector.broadcast %cst_7 : f32 to vector<16x128xf32>
    %19 = arith.subf %18, %17 : vector<16x128xf32>
    %c1_i32 = arith.constant 1 : i32
    %20 = arith.muli %arg0, %c1_i32 : i32
    %21 = arith.addi %20, %arg1 : i32
    %c16_i32 = arith.constant 16 : i32
    %22 = arith.muli %21, %c16_i32 : i32
    %23 = tpu.iota {dimensions = array<i32: 0>} : vector<16x128xi32>
    %24 = vector.broadcast %22 : i32 to vector<16x128xi32>
    %25 = arith.addi %23, %24 : vector<16x128xi32>
    %c16_i32_8 = arith.constant 16 : i32
    %26 = vector.broadcast %c16_i32_8 : i32 to vector<16x128xi32>
    %27 = arith.cmpi slt, %25, %26 : vector<16x128xi32>
    %cst_9 = arith.constant 0.000000e+00 : f32
    %28 = vector.broadcast %cst_9 : f32 to vector<16x128xf32>
    %29 = arith.select %27, %19, %28 : vector<16x128xi1>, vector<16x128xf32>
    %c0_10 = arith.constant 0 : index
    %c0_11 = arith.constant 0 : index
    %30 = vector.load %arg4[%c0_10, %c0_11] : memref<8x128xf32, #tpu.memory_space<vmem>>, vector<8x128xf32>
    %31 = vector.shape_cast %29 : vector<16x128xf32> to vector<2x8x128xf32>
    %cst_12 = arith.constant dense<0.000000e+00> : vector<8x128xf32>
    %32 = vector.multi_reduction <add>, %31, %cst_12 [0] : vector<2x8x128xf32> to vector<8x128xf32>
    %33 = arith.addf %30, %32 : vector<8x128xf32>
    %c0_13 = arith.constant 0 : index
    %c0_14 = arith.constant 0 : index
    %34 = vector.load %arg4[%c0_13, %c0_14] : memref<8x128xf32, #tpu.memory_space<vmem>>, vector<8x128xf32>
    tpu.vector_store %arg4[%c0_13, %c0_14], %33 {strides = array<i32>} : memref<8x128xf32, #tpu.memory_space<vmem>>, vector<8x128xf32>,
    return
  }
  func.func @transform_0(%arg0: i32, %arg1: i32) -> (i32, i32) {
    %c1_i32 = arith.constant 1 : i32
    %0 = arith.muli %arg0, %c1_i32 : i32
    %1 = arith.addi %0, %arg1 : i32
    %c0_i32 = arith.constant 0 : i32
    %2 = arith.minsi %1, %c0_i32 : i32
    %c0_i32_0 = arith.constant 0 : i32
    %c0_i32_1 = arith.constant 0 : i32
    return %2, %c0_i32_0 : i32, i32
  }
  func.func @transform_1(%arg0: i32, %arg1: i32) -> (i32, i32) {
    %c1_i32 = arith.constant 1 : i32
    %0 = arith.muli %arg0, %c1_i32 : i32
    %1 = arith.addi %0, %arg1 : i32
    %c0_i32 = arith.constant 0 : i32
    %2 = arith.minsi %1, %c0_i32 : i32
    %c0_i32_0 = arith.constant 0 : i32
    %c0_i32_1 = arith.constant 0 : i32
    return %2, %c0_i32_0 : i32, i32
  }
  func.func @transform_2(%arg0: i32, %arg1: i32) -> (i32, i32) {
    %c0_i32 = arith.constant 0 : i32
    %c0_i32_0 = arith.constant 0 : i32
    return %arg0, %c0_i32 : i32, i32
  }
}

</mosaic_0001>

<bundles_post_ra>
// kernel: tpu_custom_call.1
= control target key start
LH: loop header
LB: loop body
LE: loop exit
PB: predicated region body
PF: predicated region fallthrough
CT: control target
= control target key end

     0   :  { %7 = vsyncpa [#allocation3], 0  ;;  %s238_s0 = inlined_call_operand.hbm [shape: f32[16,128], index: 0, kind: input, shape index: {}]   ;;  %s239_s1 = inlined_call_operand.hbm [shape: f32[16,128], index: 1, kind: input, shape index: {}]   ;;  %s240_s2 = inlined_call_operand.hbm [shape: f32[8,128], index: 2, kind: output, shape index: {}]  }
   0x1   :  { %8 = vsyncpa [#allocation6], 0 }
   0x2   :  { %9 = vsyncpa [#allocation4], 0  ;;  %s209_s9 = smov [#allocation2]  }
   0x3   :  { %s21_s10 = sshll.u32 %s209_s9, 4  ;;  %s22_s10 = int_to_ptr.vmem [resolvable:$true] %s21_s10 }
   0x4   :  { %s151_s11 = scalar_lea.vmem %s22_s10, 256  ;;  %p156_p1 = scmp.lt.s32.totalorder %s22_s10, %s22_s10 }
   0x5   :  { %p152_p0 = scmp.ne.s32.totalorder %s22_s10, %s151_s11  ;;  %p157_p2 = scmp.lt.s32.totalorder %s151_s11, %s151_s11 }
   0x7   :  { %p158_p3 = por %p157_p2, %p156_p1 }
   0x9   :  { %p159_p4 = pnand %p158_p3, %p152_p0 }
   0xb   :  { %162 = shalt.err (!%p159_p4)
}
   0xc   :  { %s210_s12 = smov 128   ;;  %s211_s13 = smov 8  }
   0xd   :  { %27 = dma.hbm_to_vmem [thread:$0]  %s238_s0, 256, %s22_s10, [#allocation3], %s210_s12, %s210_s12, %s211_s13  }
   0xe   :  { %s212_s16 = smov [#allocation5]  }
   0xf   :  { %s39_s17 = sshll.u32 %s212_s16, 4  ;;  %s40_s17 = int_to_ptr.vmem [resolvable:$true] %s39_s17 }
  0x10   :  { %s171_s18 = scalar_lea.vmem %s40_s17, 256  ;;  %p176_p6 = scmp.lt.s32.totalorder %s40_s17, %s40_s17 }
  0x11   :  { %p172_p5 = scmp.ne.s32.totalorder %s40_s17, %s171_s18  ;;  %p177_p7 = scmp.lt.s32.totalorder %s171_s18, %s171_s18 }
  0x13   :  { %p178_p8 = por %p177_p7, %p176_p6 }
  0x15   :  { %p179_p9 = pnand %p178_p8, %p172_p5 }
  0x17   :  { %182 = shalt.err (!%p179_p9)
}
  0x18   :  { %45 = dma.hbm_to_vmem [thread:$0]  %s239_s1, 256, %s40_s17, [#allocation6], %s210_s12, %s210_s12, %s211_s13  }
  0x19   :  { %203 = dma.done.wait [#allocation3], 256  }
  0x1a   :  { %204 = vsyncadd [#allocation3], 4294967040 }
  0x1b   :  { %205 = dma.done.wait [#allocation6], 256  }
  0x1c   :  { %206 = vsyncadd [#allocation6], 4294967040  ;;  %v65_v0 = vld [vmem:[#allocation2] sm:$0xff]  ;;  %v66_v1 = vld [vmem:[#allocation2 + $0x8] sm:$0xff]  ;;  %s213_s0 = smov [#allocation7]  }
  0x1d   :  { %135 = vlog2.f32 %v65_v0  ;;  %v75_v2 = vsub.f32 1.0, %v65_v0  ;;  %v76_v3 = vsub.f32 1.0, %v66_v1  ;;  %v67_v5 = vld [vmem:[#allocation5] sm:$0xff]  ;;  %v68_v7 = vld [vmem:[#allocation5 + $0x8] sm:$0xff]  ;;  %s115_s1 = sshll.u32 %s213_s0, 4  ;;  %s116_s1 = int_to_ptr.vmem [resolvable:$true] %s115_s1 }
  0x1e   :  { %137 = vlog2.f32 %v66_v1  ;;  %v85_v14 = vsub.f32 1.0, %v67_v5  ;;  %v86_v17 = vsub.f32 1.0, %v68_v7  ;;  %s183_s21 = scalar_lea.vmem %s116_s1, 128  ;;  %p188_p11 = scmp.lt.s32.totalorder %s116_s1, %s116_s1 }
  0x1f   :  { %139 = vlog2.f32 %v75_v2  ;;  %p184_p10 = scmp.ne.s32.totalorder %s116_s1, %s183_s21  ;;  %p189_p12 = scmp.lt.s32.totalorder %s183_s21, %s183_s21 }
  0x20   :  { %141 = vlog2.f32 %v76_v3 }
  0x21   :  { %p190_p13 = por %p189_p12, %p188_p11 }
  0x23   :  { %p191_p0 = pnand %p190_p13, %p184_p10 }
  0x2a   :  { %v136_v4 = vpop.eup %135 }
  0x2b   :  { %v138_v6 = vpop.eup %137  ;;  %v70_v8 = vmul.f32 0.6931472, %v136_v4 }
  0x2c   :  { %v140_v9 = vpop.eup %139  ;;  %v72_v10 = vmul.f32 0.6931472, %v138_v6 }
  0x2d   :  { %v142_v11 = vpop.eup %141  ;;  %v73_v12 = vmax.f32 %v70_v8, -100.0  ;;  %v78_v13 = vmul.f32 0.6931472, %v140_v9 }
  0x2e   :  { %v74_v15 = vmax.f32 %v72_v10, -100.0  ;;  %v80_v16 = vmul.f32 0.6931472, %v142_v11 }
  0x2f   :  { %v81_v18 = vmax.f32 %v78_v13, -100.0  ;;  %v83_v19 = vmul.f32 %v73_v12, %v67_v5 }
  0x30   :  { %v82_v20 = vmax.f32 %v80_v16, -100.0  ;;  %v84_v21 = vmul.f32 %v74_v15, %v68_v7 }
  0x31   :  { %v87_v22 = vmul.f32 %v85_v14, %v81_v18 }
  0x32   :  { %v88_v23 = vmul.f32 %v86_v17, %v82_v20 }
  0x33   :  { %v89_v24 = vadd.f32 %v87_v22, %v83_v19 }
  0x34   :  { %v90_v25 = vadd.f32 %v88_v23, %v84_v21 }
  0x35   :  { %v91_v26 = vsub.f32 0.0, %v89_v24 }
  0x36   :  { %v92_v27 = vsub.f32 0.0, %v90_v25 }
  0x38   :  { %v106_v28 = vadd.f32 %v92_v27, %v91_v26 }
  0x3a   :  { %108 = vst [vmem:[#allocation7] sm:$0xff] %v106_v28 }
  0x3b   :  { %194 = shalt.err (!%p191_p0)
}
  0x3c   :  { %118 = dma.vmem_to_hbm [thread:$0]  %s116_s1, 128, %s240_s2, [#allocation4]  }
  0x3d   :  { %207 = dma.done.wait [#allocation4], 128  }
  0x3e   :  { %208 = vsyncadd [#allocation4], 4294967168 }
  0x3f   :  { %122 = vsyncpa [#allocation3], 1 }
  0x40   :  { %123 = vsyncpa [#allocation6], 1 }
  0x41   :  { %124 = vsyncpa [#allocation4], 1 }

</bundles_post_ra>
